<compile_context>
chip_gen: v6e
topology: v6e:2x2x1
jax: 0.10.0
libtpu: 0.0.40
codegen_flags: <defaults>
</compile_context>

<pallas_src>
import math

import jax
import jax.numpy as jnp
from jax.experimental import pallas as pl
from jax.experimental.pallas import tpu as pltpu


def _mha_kernel(q_ref, k_ref, v_ref, mask_ref,
                wqkv_ref, bqkv_ref, wo_ref, bo_ref,
                o_ref, acc_ref):
    """One grid step == (one batch block, one head).

    Block shapes:
      q/k/v_ref : (BB*S, D)   bf16 activations, flattened lane-dense slab
      mask_ref  : (BB, S, S)  int8, nonzero == attend
      wqkv_ref  : (3, D, hd)  this head's q/k/v projection weights (bf16)
      bqkv_ref  : (3, 1, hd)  f32 q/k/v projection biases
      wo_ref    : (hd, D)     this head's slice of the output projection (bf16)
      bo_ref    : (1, D)      f32 output bias
      o_ref     : (BB*S, D)   f32 result
      acc_ref   : (BB*S, D)   f32 VMEM accumulator (persists across head axis)
    """
    h = pl.program_id(1)
    BB, S, _ = mask_ref.shape
    hd, D = wo_ref.shape
    cdt = q_ref.dtype            # MXU operand dtype (bf16 by default)
    f32 = jnp.float32

    # Per-head input projections: (BB*S, D) @ (D, hd) on the MXU, f32 accumulate.
    # The 1/sqrt(hd) attention scale is folded onto the projected queries.
    scale = 1.0 / math.sqrt(hd)
    qh = (jnp.dot(q_ref[...], wqkv_ref[0], preferred_element_type=f32)
          + bqkv_ref[0]) * scale
    kh = jnp.dot(k_ref[...], wqkv_ref[1], preferred_element_type=f32) + bqkv_ref[1]
    vh = jnp.dot(v_ref[...], wqkv_ref[2], preferred_element_type=f32) + bqkv_ref[2]
    qh = qh.reshape(BB, S, hd)
    kh = kh.reshape(BB, S, hd)
    vh = vh.reshape(BB, S, hd)

    # Scores: batched over the batch block, contracting the head dim of q and k
    # directly (no explicit K transpose).
    s = jnp.einsum("bqe,bke->bqk", qh.astype(cdt), kh.astype(cdt),
                   preferred_element_type=f32)                 # (BB, S, S) f32

    # Mask: nonzero == keep (matches torch masked_fill_(mask == False, -inf)).
    # Large finite negative => fully-masked rows stay NaN-free (uniform weights).
    keep = mask_ref[...].astype(f32)
    s = jnp.where(keep > 0.0, s, f32(-1e30))

    # Softmax in f32; the approximate reciprocal runs on the otherwise-idle EUP.
    m = jnp.max(s, axis=-1, keepdims=True)
    e = jnp.exp(s - m)
    p = e * pl.reciprocal(jnp.sum(e, axis=-1, keepdims=True), approx=True)

    # Per-head context and this head's contribution to the output projection.
    ctx = jnp.einsum("bqk,bke->bqe", p.astype(cdt), vh.astype(cdt),
                     preferred_element_type=f32)               # (BB, S, hd) f32
    contrib = jnp.dot(ctx.reshape(BB * S, hd).astype(cdt), wo_ref[...],
                      preferred_element_type=f32)              # (BB*S, D) f32

    # Accumulate the output projection across heads; bias folded into the init.
    @pl.when(h == 0)
    def _():
        acc_ref[...] = jnp.zeros_like(acc_ref) + bo_ref[...]

    acc_ref[...] += contrib

    @pl.when(h == pl.num_programs(1) - 1)
    def _():
        o_ref[...] = acc_ref[...].astype(o_ref.dtype)


def _choose_block_b(B, S, D, budget_bytes=4 * 1024 * 1024):
    """Batch elements per grid step: as many as fit a modest f32 working-set budget."""
    per_b = 4 * (3 * S * S + 4 * S * D)       # scores/softmax + projections, f32
    bb = max(1, min(B, budget_bytes // max(per_b, 1)))
    while B % bb:
        bb -= 1
    # Keep the flattened (bb*S, D) activation block (8,128)-legal.
    if (bb * S) % 8 != 0 and bb != B:
        bb = B
    return bb


def multi_head_attention(q, k, v, mask, params, *, heads,
                         compute_dtype=jnp.bfloat16, block_b=None):
    """q, k, v: (B, S, D); mask: (B, 1, S, S), nonzero/True == attend;
    params: PyTorch-convention Linear weights W (out, in) and biases b (out,)."""
    B, S, D = q.shape
    hd = D // heads
    assert heads * hd == D, "dmodel must be divisible by heads"

    # --- weight prep (one-time, wrapper-side): transpose to (in, out) and move
    #     the head split onto the weights so the kernel never slices lanes. ---
    wq_h = params["wq"].T.reshape(D, heads, hd).transpose(1, 0, 2)    # (H, D, hd)
    wk_h = params["wk"].T.reshape(D, heads, hd).transpose(1, 0, 2)
    wv_h = params["wv"].T.reshape(D, heads, hd).transpose(1, 0, 2)
    wqkv = jnp.stack([wq_h, wk_h, wv_h]).astype(compute_dtype)        # (3, H, D, hd)
    wo_h = params["wo"].T.reshape(heads, hd, D).astype(compute_dtype)  # (H, hd, D)

    bqkv = jnp.stack([params["bq"], params["bk"], params["bv"]])
    bqkv = bqkv.reshape(3, heads, 1, hd).astype(jnp.float32)          # (3, H, 1, hd)
    bo = params["bo"].reshape(1, D).astype(jnp.float32)

    # --- activation / mask prep: lane-dense flattened bf16 slabs, int8 mask ---
    qf = q.reshape(B * S, D).astype(compute_dtype)
    kf = k.reshape(B * S, D).astype(compute_dtype)
    vf = v.reshape(B * S, D).astype(compute_dtype)
    mask_i8 = mask.reshape(B, S, S).astype(jnp.int8)

    if block_b is None:
        block_b = _choose_block_b(B, S, D)
    rows = block_b * S
    grid = (B // block_b, heads)

    act_spec = pl.BlockSpec((rows, D), lambda b, h: (b, 0))
    msk_spec = pl.BlockSpec((block_b, S, S), lambda b, h: (b, 0, 0))
    wqkv_spec = pl.BlockSpec((3, None, D, hd), lambda b, h: (0, h, 0, 0))
    bqkv_spec = pl.BlockSpec((3, None, 1, hd), lambda b, h: (0, h, 0, 0))
    wo_spec = pl.BlockSpec((None, hd, D), lambda b, h: (h, 0, 0))
    bo_spec = pl.BlockSpec((1, D), lambda b, h: (0, 0))
    out_spec = pl.BlockSpec((rows, D), lambda b, h: (b, 0))

    out = pl.pallas_call(
        _mha_kernel,
        out_shape=jax.ShapeDtypeStruct((B * S, D), jnp.float32),
        grid_spec=pltpu.PrefetchScalarGridSpec(
            num_scalar_prefetch=0,
            grid=grid,
            in_specs=[act_spec, act_spec, act_spec, msk_spec,
                      wqkv_spec, bqkv_spec, wo_spec, bo_spec],
            out_specs=out_spec,
            scratch_shapes=[pltpu.VMEM((rows, D), jnp.float32)],
        ),
        compiler_params=pltpu.CompilerParams(
            dimension_semantics=("parallel", "arbitrary")),
    )(qf, kf, vf, mask_i8, wqkv, bqkv, wo_h, bo)

    return out.reshape(B, S, D)


def _reference(q, k, v, mask, params, *, heads):
    """Pure-JAX f32 reference mirroring the PyTorch forward."""
    B, S, D = q.shape
    hd = D // heads

    def lin(x, w, b):
        return x @ w.T + b

    qp = lin(q, params["wq"], params["bq"]).reshape(B, S, heads, hd).transpose(0, 2, 1, 3)
    kp = lin(k, params["wk"], params["bk"]).reshape(B, S, heads, hd).transpose(0, 2, 1, 3)
    vp = lin(v, params["wv"], params["bv"]).reshape(B, S, heads, hd).transpose(0, 2, 1, 3)

    att = jnp.einsum("bhqd,bhkd->bhqk", qp, kp) / math.sqrt(hd)
    att = jnp.where(mask, att, -jnp.inf)
    att = jax.nn.softmax(att, axis=-1)
    out = jnp.einsum("bhqk,bhkd->bhqd", att, vp)
    out = out.transpose(0, 2, 1, 3).reshape(B, S, D)
    return lin(out, params["wo"], params["bo"])


if __name__ == "__main__":
    B, S, D, H = 2, 8, 32, 4

    key = jax.random.PRNGKey(0)
    keys = jax.random.split(key, 12)

    params = {
        "wq": jax.random.normal(keys[0], (D, D), jnp.float32) * 0.1,
        "bq": jax.random.normal(keys[1], (D,), jnp.float32) * 0.1,
        "wk": jax.random.normal(keys[2], (D, D), jnp.float32) * 0.1,
        "bk": jax.random.normal(keys[3], (D,), jnp.float32) * 0.1,
        "wv": jax.random.normal(keys[4], (D, D), jnp.float32) * 0.1,
        "bv": jax.random.normal(keys[5], (D,), jnp.float32) * 0.1,
        "wo": jax.random.normal(keys[6], (D, D), jnp.float32) * 0.1,
        "bo": jax.random.normal(keys[7], (D,), jnp.float32) * 0.1,
    }

    q = jax.random.normal(keys[8], (B, S, D), jnp.float32)
    k = jax.random.normal(keys[9], (B, S, D), jnp.float32)
    v = jax.random.normal(keys[10], (B, S, D), jnp.float32)

    # Causal mask (B, 1, S, S), broadcast over heads; True == attend
    # (same convention as torch masked_fill_(mask == False, -inf)).
    causal = jnp.tril(jnp.ones((S, S), dtype=bool))
    mask = jnp.broadcast_to(causal, (B, 1, S, S))

    out = multi_head_attention(q, k, v, mask, params, heads=H)
    out = jax.block_until_ready(out)

    ref = _reference(q, k, v, mask, params, heads=H)
    assert out.shape == (B, S, D)
    # bf16 MXU operands (f32 accumulation) vs the f32 reference.
    assert jnp.allclose(out, ref, atol=3e-2, rtol=3e-2), "mismatch vs reference"

    print("KERNEL_OK")
</pallas_src>

<mosaic_0001>
module attributes {stable_mosaic.version = 11 : i64} {
  func.func @_mha_kernel(%arg0: i32, %arg1: i32, %arg2: memref<16x32xbf16, #tpu.memory_space<vmem>>, %arg3: memref<16x32xbf16, #tpu.memory_space<vmem>>, %arg4: memref<16x32xbf16, #tpu.memory_space<vmem>>, %arg5: memref<2x8x8xi8, #tpu.memory_space<vmem>>, %arg6: memref<3x1x32x8xbf16, #tpu.memory_space<vmem>>, %arg7: memref<3x1x1x8xf32, #tpu.memory_space<vmem>>, %arg8: memref<1x8x32xbf16, #tpu.memory_space<vmem>>, %arg9: memref<1x32xf32, #tpu.memory_space<vmem>>, %arg10: memref<16x32xf32, #tpu.memory_space<vmem>>, %arg11: memref<16x32xf32, #tpu.memory_space<vmem>>) attributes {dimension_semantics = [#tpu.dimension_semantics<parallel>, #tpu.dimension_semantics<arbitrary>], iteration_bounds = array<i64: 1, 4>, scalar_prefetch = 0 : i64, scratch_operands = 1 : i64, tpu.core_type = #tpu.core_type<tc>, window_params = [{transform_indices = @transform_0, window_bounds = array<i64: 16, 32>}, {transform_indices = @transform_1, window_bounds = array<i64: 16, 32>}, {transform_indices = @transform_2, window_bounds = array<i64: 16, 32>}, {transform_indices = @transform_3, window_bounds = array<i64: 2, 8, 8>}, {transform_indices = @transform_4, window_bounds = array<i64: 3, 1, 32, 8>}, {transform_indices = @transform_5, window_bounds = array<i64: 3, 1, 1, 8>}, {transform_indices = @transform_6, window_bounds = array<i64: 1, 8, 32>}, {pipeline_mode = #tpu.pipeline_mode<synchronous>, transform_indices = @transform_7, window_bounds = array<i64: 1, 32>}, {transform_indices = @transform_8, window_bounds = array<i64: 16, 32>}]} {
    %c0 = arith.constant 0 : index
    %c0_0 = arith.constant 0 : index
    %0 = vector.load %arg2[%c0, %c0_0] : memref<16x32xbf16, #tpu.memory_space<vmem>>, vector<16x32xbf16>
    %c0_1 = arith.constant 0 : index
    %c0_2 = arith.constant 0 : index
    %c0_3 = arith.constant 0 : index
    %c0_4 = arith.constant 0 : index
    %1 = vector.load %arg6[%c0_1, %c0_2, %c0_3, %c0_4] : memref<3x1x32x8xbf16, #tpu.memory_space<vmem>>, vector<1x1x32x8xbf16>
    %2 = vector.shape_cast %1 : vector<1x1x32x8xbf16> to vector<32x8xbf16>
    %cst = arith.constant dense<0.000000e+00> : vector<16x8xf32>
    %3 = tpu.matmul %0, %2, %cst {dimension_numbers = #tpu.dot_dimension_numbers<[1], [0], [0], [1], [0, 0, 1, 1], [], []>} : vector<16x32xbf16>, vector<32x8xbf16>, vector<16x8xf32> -> vector<16x8xf32>
    %c0_5 = arith.constant 0 : index
    %c0_6 = arith.constant 0 : index
    %c0_7 = arith.constant 0 : index
    %c0_8 = arith.constant 0 : index
    %4 = vector.load %arg7[%c0_5, %c0_6, %c0_7, %c0_8] : memref<3x1x1x8xf32, #tpu.memory_space<vmem>>, vector<1x1x1x8xf32>
    %5 = vector.shape_cast %4 : vector<1x1x1x8xf32> to vector<1x8xf32>
    %6 = vector.broadcast %5 : vector<1x8xf32> to vector<16x8xf32>
    %7 = arith.addf %3, %6 : vector<16x8xf32>
    %cst_9 = arith.constant 0.353553385 : f32
    %8 = vector.broadcast %cst_9 : f32 to vector<16x8xf32>
    %9 = arith.mulf %7, %8 : vector<16x8xf32>
    %c0_10 = arith.constant 0 : index
    %c0_11 = arith.constant 0 : index
    %10 = vector.load %arg3[%c0_10, %c0_11] : memref<16x32xbf16, #tpu.memory_space<vmem>>, vector<16x32xbf16>
    %c1 = arith.constant 1 : index
    %c0_12 = arith.constant 0 : index
    %c0_13 = arith.constant 0 : index
    %c0_14 = arith.constant 0 : index
    %11 = vector.load %arg6[%c1, %c0_12, %c0_13, %c0_14] : memref<3x1x32x8xbf16, #tpu.memory_space<vmem>>, vector<1x1x32x8xbf16>
    %12 = vector.shape_cast %11 : vector<1x1x32x8xbf16> to vector<32x8xbf16>
    %cst_15 = arith.constant dense<0.000000e+00> : vector<16x8xf32>
    %13 = tpu.matmul %10, %12, %cst_15 {dimension_numbers = #tpu.dot_dimension_numbers<[1], [0], [0], [1], [0, 0, 1, 1], [], []>} : vector<16x32xbf16>, vector<32x8xbf16>, vector<16x8xf32> -> vector<16x8xf32>
    %c1_16 = arith.constant 1 : index
    %c0_17 = arith.constant 0 : index
    %c0_18 = arith.constant 0 : index
    %c0_19 = arith.constant 0 : index
    %14 = vector.load %arg7[%c1_16, %c0_17, %c0_18, %c0_19] : memref<3x1x1x8xf32, #tpu.memory_space<vmem>>, vector<1x1x1x8xf32>
    %15 = vector.shape_cast %14 : vector<1x1x1x8xf32> to vector<1x8xf32>
    %16 = vector.broadcast %15 : vector<1x8xf32> to vector<16x8xf32>
    %17 = arith.addf %13, %16 : vector<16x8xf32>
    %c0_20 = arith.constant 0 : index
    %c0_21 = arith.constant 0 : index
    %18 = vector.load %arg4[%c0_20, %c0_21] : memref<16x32xbf16, #tpu.memory_space<vmem>>, vector<16x32xbf16>
    %c2 = arith.constant 2 : index
    %c0_22 = arith.constant 0 : index
    %c0_23 = arith.constant 0 : index
    %c0_24 = arith.constant 0 : index
    %19 = vector.load %arg6[%c2, %c0_22, %c0_23, %c0_24] : memref<3x1x32x8xbf16, #tpu.memory_space<vmem>>, vector<1x1x32x8xbf16>
    %20 = vector.shape_cast %19 : vector<1x1x32x8xbf16> to vector<32x8xbf16>
    %cst_25 = arith.constant dense<0.000000e+00> : vector<16x8xf32>
    %21 = tpu.matmul %18, %20, %cst_25 {dimension_numbers = #tpu.dot_dimension_numbers<[1], [0], [0], [1], [0, 0, 1, 1], [], []>} : vector<16x32xbf16>, vector<32x8xbf16>, vector<16x8xf32> -> vector<16x8xf32>
    %c2_26 = arith.constant 2 : index
    %c0_27 = arith.constant 0 : index
    %c0_28 = arith.constant 0 : index
    %c0_29 = arith.constant 0 : index
    %22 = vector.load %arg7[%c2_26, %c0_27, %c0_28, %c0_29] : memref<3x1x1x8xf32, #tpu.memory_space<vmem>>, vector<1x1x1x8xf32>
    %23 = vector.shape_cast %22 : vector<1x1x1x8xf32> to vector<1x8xf32>
    %24 = vector.broadcast %23 : vector<1x8xf32> to vector<16x8xf32>
    %25 = arith.addf %21, %24 : vector<16x8xf32>
    %26 = vector.shape_cast %9 : vector<16x8xf32> to vector<2x8x8xf32>
    %27 = vector.shape_cast %17 : vector<16x8xf32> to vector<2x8x8xf32>
    %28 = vector.shape_cast %25 : vector<16x8xf32> to vector<2x8x8xf32>
    %29 = arith.truncf %26 : vector<2x8x8xf32> to vector<2x8x8xbf16>
    %30 = arith.truncf %27 : vector<2x8x8xf32> to vector<2x8x8xbf16>
    "tpu.trace_start"() <{level = 10 : i32, message = "bqe,bke->bqk"}> : () -> ()
    %cst_30 = arith.constant dense<0.000000e+00> : vector<2x8x8xf32>
    %31 = tpu.matmul %29, %30, %cst_30 {dimension_numbers = #tpu.dot_dimension_numbers<[2], [2], [1], [1], [0, 0, 0, 1, 1, 1], [0], [0]>} : vector<2x8x8xbf16>, vector<2x8x8xbf16>, vector<2x8x8xf32> -> vector<2x8x8xf32>
    "tpu.trace_stop"() : () -> ()
    %c0_31 = arith.constant 0 : index
    %c0_32 = arith.constant 0 : index
    %c0_33 = arith.constant 0 : index
    %32 = vector.load %arg5[%c0_31, %c0_32, %c0_33] : memref<2x8x8xi8, #tpu.memory_space<vmem>>, vector<2x8x8xi8>
    %33 = arith.sitofp %32 : vector<2x8x8xi8> to vector<2x8x8xf32>
    %cst_34 = arith.constant 0.000000e+00 : f32
    %34 = vector.broadcast %cst_34 : f32 to vector<2x8x8xf32>
    %35 = arith.cmpf ogt, %33, %34 : vector<2x8x8xf32>
    %cst_35 = arith.constant -1.000000e+30 : f32
    %36 = vector.broadcast %cst_35 : f32 to vector<2x8x8xf32>
    %37 = arith.select %35, %31, %36 : vector<2x8x8xi1>, vector<2x8x8xf32>
    %cst_36 = arith.constant dense<0xFF800000> : vector<2x8xf32>
    %38 = vector.multi_reduction <maximumf>, %37, %cst_36 [2] : vector<2x8x8xf32> to vector<2x8xf32>
    %39 = vector.shape_cast %38 : vector<2x8xf32> to vector<2x8x1xf32>
    %40 = vector.broadcast %39 : vector<2x8x1xf32> to vector<2x8x8xf32>
    %41 = arith.subf %37, %40 : vector<2x8x8xf32>
    %42 = math.exp %41 : vector<2x8x8xf32>
    %cst_37 = arith.constant dense<0.000000e+00> : vector<2x8xf32>
    %43 = vector.multi_reduction <add>, %42, %cst_37 [2] : vector<2x8x8xf32> to vector<2x8xf32>
    %44 = vector.shape_cast %43 : vector<2x8xf32> to vector<2x8x1xf32>
    %45 = tpu.reciprocal %44 {approx = true} : vector<2x8x1xf32> -> vector<2x8x1xf32>
    %46 = vector.broadcast %45 : vector<2x8x1xf32> to vector<2x8x8xf32>
    %47 = arith.mulf %42, %46 : vector<2x8x8xf32>
    %48 = arith.truncf %47 : vector<2x8x8xf32> to vector<2x8x8xbf16>
    %49 = arith.truncf %28 : vector<2x8x8xf32> to vector<2x8x8xbf16>
    "tpu.trace_start"() <{level = 10 : i32, message = "bqk,bke->bqe"}> : () -> ()
    %cst_38 = arith.constant dense<0.000000e+00> : vector<2x8x8xf32>
    %50 = tpu.matmul %48, %49, %cst_38 {dimension_numbers = #tpu.dot_dimension_numbers<[2], [1], [1], [2], [0, 0, 0, 1, 1, 2], [0], [0]>} : vector<2x8x8xbf16>, vector<2x8x8xbf16>, vector<2x8x8xf32> -> vector<2x8x8xf32>
    "tpu.trace_stop"() : () -> ()
    %51 = vector.shape_cast %50 : vector<2x8x8xf32> to vector<16x8xf32>
    %52 = arith.truncf %51 : vector<16x8xf32> to vector<16x8xbf16>
    %c0_39 = arith.constant 0 : index
    %c0_40 = arith.constant 0 : index
    %c0_41 = arith.constant 0 : index
    %53 = vector.load %arg8[%c0_39, %c0_40, %c0_41] : memref<1x8x32xbf16, #tpu.memory_space<vmem>>, vector<1x8x32xbf16>
    %54 = vector.shape_cast %53 : vector<1x8x32xbf16> to vector<8x32xbf16>
    %cst_42 = arith.constant dense<0.000000e+00> : vector<16x32xf32>
    %55 = tpu.matmul %52, %54, %cst_42 {dimension_numbers = #tpu.dot_dimension_numbers<[1], [0], [0], [1], [0, 0, 1, 1], [], []>} : vector<16x8xbf16>, vector<8x32xbf16>, vector<16x32xf32> -> vector<16x32xf32>
    %c0_i32 = arith.constant 0 : i32
    %56 = arith.cmpi eq, %arg1, %c0_i32 : i32
    %57 = arith.extui %56 : i1 to i32
    %c0_i32_43 = arith.constant 0 : i32
    %58 = arith.cmpi ne, %57, %c0_i32_43 : i32
    scf.if %58 {
      %cst_49 = arith.constant 0.000000e+00 : f32
      %65 = vector.broadcast %cst_49 : f32 to vector<16x32xf32>
      %c0_50 = arith.constant 0 : index
      %c0_51 = arith.constant 0 : index
      %66 = vector.load %arg9[%c0_50, %c0_51] : memref<1x32xf32, #tpu.memory_space<vmem>>, vector<1x32xf32>
      %67 = vector.broadcast %66 : vector<1x32xf32> to vector<16x32xf32>
      %68 = arith.addf %65, %67 : vector<16x32xf32>
      %c0_52 = arith.constant 0 : index
      %c0_53 = arith.constant 0 : index
      %69 = vector.load %arg11[%c0_52, %c0_53] : memref<16x32xf32, #tpu.memory_space<vmem>>, vector<16x32xf32>
      tpu.vector_store %arg11[%c0_52, %c0_53], %68 {strides = array<i32>} : memref<16x32xf32, #tpu.memory_space<vmem>>, vector<16x32xf32>,
    } else {
    }
    %c0_44 = arith.constant 0 : index
    %c0_45 = arith.constant 0 : index
    %59 = vector.load %arg11[%c0_44, %c0_45] : memref<16x32xf32, #tpu.memory_space<vmem>>, vector<16x32xf32>
    %60 = arith.addf %59, %55 : vector<16x32xf32>
    %c0_46 = arith.constant 0 : index
    %c0_47 = arith.constant 0 : index
    %61 = vector.load %arg11[%c0_46, %c0_47] : memref<16x32xf32, #tpu.memory_space<vmem>>, vector<16x32xf32>
    tpu.vector_store %arg11[%c0_46, %c0_47], %60 {strides = array<i32>} : memref<16x32xf32, #tpu.memory_space<vmem>>, vector<16x32xf32>,
    %c3_i32 = arith.constant 3 : i32
    %62 = arith.cmpi eq, %arg1, %c3_i32 : i32
    %63 = arith.extui %62 : i1 to i32
    %c0_i32_48 = arith.constant 0 : i32
    %64 = arith.cmpi ne, %63, %c0_i32_48 : i32
    scf.if %64 {
      %c0_49 = arith.constant 0 : index
      %c0_50 = arith.constant 0 : index
      %65 = vector.load %arg11[%c0_49, %c0_50] : memref<16x32xf32, #tpu.memory_space<vmem>>, vector<16x32xf32>
      %c0_51 = arith.constant 0 : index
      %c0_52 = arith.constant 0 : index
      %66 = vector.load %arg10[%c0_51, %c0_52] : memref<16x32xf32, #tpu.memory_space<vmem>>, vector<16x32xf32>
      tpu.vector_store %arg10[%c0_51, %c0_52], %65 {strides = array<i32>} : memref<16x32xf32, #tpu.memory_space<vmem>>, vector<16x32xf32>,
    } else {
    }
    return
  }
  func.func @transform_0(%arg0: i32, %arg1: i32) -> (i32, i32) {
    %c0_i32 = arith.constant 0 : i32
    %c0_i32_0 = arith.constant 0 : i32
    return %arg0, %c0_i32 : i32, i32
  }
  func.func @transform_1(%arg0: i32, %arg1: i32) -> (i32, i32) {
    %c0_i32 = arith.constant 0 : i32
    %c0_i32_0 = arith.constant 0 : i32
    return %arg0, %c0_i32 : i32, i32
  }
  func.func @transform_2(%arg0: i32, %arg1: i32) -> (i32, i32) {
    %c0_i32 = arith.constant 0 : i32
    %c0_i32_0 = arith.constant 0 : i32
    return %arg0, %c0_i32 : i32, i32
  }
  func.func @transform_3(%arg0: i32, %arg1: i32) -> (i32, i32, i32) {
    %c0_i32 = arith.constant 0 : i32
    %c0_i32_0 = arith.constant 0 : i32
    %c0_i32_1 = arith.constant 0 : i32
    return %arg0, %c0_i32, %c0_i32_0 : i32, i32, i32
  }
  func.func @transform_4(%arg0: i32, %arg1: i32) -> (i32, i32, i32, i32) {
    %c0_i32 = arith.constant 0 : i32
    %c0_i32_0 = arith.constant 0 : i32
    %c0_i32_1 = arith.constant 0 : i32
    %c0_i32_2 = arith.constant 0 : i32
    return %c0_i32, %arg1, %c0_i32_0, %c0_i32_1 : i32, i32, i32, i32
  }
  func.func @transform_5(%arg0: i32, %arg1: i32) -> (i32, i32, i32, i32) {
    %c0_i32 = arith.constant 0 : i32
    %c0_i32_0 = arith.constant 0 : i32
    %c0_i32_1 = arith.constant 0 : i32
    %c0_i32_2 = arith.constant 0 : i32
    return %c0_i32, %arg1, %c0_i32_0, %c0_i32_1 : i32, i32, i32, i32
  }
  func.func @transform_6(%arg0: i32, %arg1: i32) -> (i32, i32, i32) {
    %c0_i32 = arith.constant 0 : i32
    %c0_i32_0 = arith.constant 0 : i32
    %c0_i32_1 = arith.constant 0 : i32
    return %arg1, %c0_i32, %c0_i32_0 : i32, i32, i32
  }
  func.func @transform_7(%arg0: i32, %arg1: i32) -> (i32, i32) {
    %c0_i32 = arith.constant 0 : i32
    %c0_i32_0 = arith.constant 0 : i32
    %c0_i32_1 = arith.constant 0 : i32
    return %c0_i32, %c0_i32_0 : i32, i32
  }
  func.func @transform_8(%arg0: i32, %arg1: i32) -> (i32, i32) {
    %c0_i32 = arith.constant 0 : i32
    %c0_i32_0 = arith.constant 0 : i32
    return %arg0, %c0_i32 : i32, i32
  }
}

</mosaic_0001>

<bundles_post_ra>
// kernel: tpu_custom_call.1
= control target key start
LH: loop header
LB: loop body
LE: loop exit
PB: predicated region body
PF: predicated region fallthrough
CT: control target
= control target key end

     0   :  { %13 = vsyncpa [#allocation6], 0  ;;  %s1571_s27 = smov 0   ;;  %s1573_s28 = smov 0   ;;  %s1744_s0 = inlined_call_operand.vmem [shape: bf16[16,32], index: 0, kind: input, shape index: {}]   ;;  %s1745_s1 = inlined_call_operand.vmem [shape: bf16[16,32], index: 1, kind: input, shape index: {}]   ;;  %s1746_s2 = inlined_call_operand.vmem [shape: bf16[16,32], index: 2, kind: input, shape index: {}]   ;;  %s1747_s3 = inlined_call_operand.vmem [shape: s8[2,8,8], index: 3, kind: input, shape index: {}]   ;;  %s1748_s4 = inlined_call_operand.vmem [shape: bf16[3,4,32,8], index: 4, kind: input, shape index: {}]   ;;  %s1749_s5 = inlined_call_operand.vmem [shape: f32[3,4,1,8], index: 5, kind: input, shape index: {}]   ;;  %s1750_s6 = inlined_call_operand.vmem [shape: bf16[4,8,32], index: 6, kind: input, shape index: {}]   ;;  %s1751_s7 = inlined_call_operand.vmem [shape: f32[1,32], index: 7, kind: input, shape index: {}]   ;;  %s1752_s8 = inlined_call_operand.hbm [shape: f32[16,32], index: 8, kind: output, shape index: {}]  }
   0x1   :  { %s1575_s29 = smov 0   ;;  %s1577_s30 = smov 0  }
   0x2   :  { %s1579_s9 = smov 0  }
   0x3 LB: > { %s1255_s10 = sadd.s32 4294967295, %s1519_s9   ;;  %s28_s11 = sadd.s32 1, %s1515_s30  ;;  %s1519_s9 = sphi %s1579_s9, %s19_s9   ;;  %s1515_s30 = sphi %s1577_s30, %s1758_s30   ;;  %s1511_s29 = sphi %s1575_s29, %s1757_s29   ;;  %s1507_s28 = sphi %s1573_s28, %s1756_s28   ;;  %s1503_s27 = sphi %s1571_s27, %s1755_s27  }
   0x4   : > { %p29_p0 = scmp.ge.s32.totalorder %s28_s11, 4  ;;  %p149_p1 = scmp.ne.s32.totalorder %s1507_s28, %s1503_s27 }
   0x5   : > { %p150_p2 = scmp.eq.s32.totalorder %s1519_s9, 0  ;;  %s142_s14 = sadd.s32 1, %s1507_s28 }
   0x6   : > { %s1760_s11 = smov (%p29_p0, %s28_s11), 0  ;;  %p1261_p5 = scmp.ge.s32.totalorder %s1519_s9, 4 }
   0x7   : > { %p1603_p3 = por %p150_p2, %p149_p1  ;;  %s139_s13 = ssub.s32 %s1515_s30, %s1760_s11 }
   0x8   : > { %p140_p4 = scmp.eq.s32.totalorder %s139_s13, 0  ;;  %313 = sbr.rel (%p1261_p5) target bundleno = 26 (0x1a), region = 36 }
   0xa   : > { %s1611_s15 = scalar_select %p140_p4, %s1507_s28, %s142_s14  }
   0xd   : > { %316 = sbr.rel (!%p1603_p3) target bundleno = 20 (0x14), region = 40  ;;  %s318_s16 = sand.u32 (%p1603_p3), 1, %s1507_s28  }
   0xe   : > { %s1303_s17 = sshll.u32 (%p1603_p3), %s1515_s30, 4  ;;  %s1381_s18 = smul.u32 (%p1603_p3), 48, %s318_s16 }
   0xf   : > { %s323_s21 = scalar_lea.vmem (%p1603_p3), %s1748_s4, %s1303_s17 }
  0x10   : > { %v340_v0 = vld [vmem:[%s323_s21] sm:$0xff] (%p1603_p3)   ;;  %v344_v1 = vld [vmem:[%s323_s21 + $0x8] sm:$0xff] (%p1603_p3)   ;;  %s320_s22 = scalar_lea.vmem (%p1603_p3), [#allocation3], %s1381_s18 }
  0x11   : > { %v348_v2 = vld [vmem:[%s323_s21 + $0x40] sm:$0xff] (%p1603_p3)   ;;  %v352_v3 = vld [vmem:[%s323_s21 + $0x48] sm:$0xff] (%p1603_p3)   ;;  %341 = vst [vmem:[%s320_s22] sm:$0xff] (%p1603_p3), %v340_v0   ;;  %345 = vst [vmem:[%s320_s22 + $0x8] sm:$0xff] (%p1603_p3), %v344_v1  }
  0x12   : > { %v356_v4 = vld [vmem:[%s323_s21 + $0x80] sm:$0xff]   ;;  %v360_v5 = vld [vmem:[%s323_s21 + $0x88] sm:$0xff]   ;;  %349 = vst [vmem:[%s320_s22 + $0x10] sm:$0xff] %v348_v2   ;;  %353 = vst [vmem:[%s320_s22 + $0x18] sm:$0xff] %v352_v3  }
  0x13   : > { %357 = vst [vmem:[%s320_s22 + $0x20] sm:$0xff] %v356_v4   ;;  %361 = vst [vmem:[%s320_s22 + $0x28] sm:$0xff] %v360_v5  }
  0x14 PF: > { %411 = sbr.rel (!%p1603_p3) target bundleno = 26 (0x1a), region = 81  ;;  %s413_s23 = sand.u32 (%p1603_p3), 1, %s1507_s28  }
  0x15   : > { %s416_s26 = scalar_lea.vmem (%p1603_p3), %s1749_s5, %s1515_s30  ;;  %s1382_s13 = smul.u32 (%p1603_p3), 3, %s413_s23 }
  0x16   : > { %v433_v6 = vld [vmem:[%s416_s26] sm:$0x1] (%p1603_p3)  ;;  %v435_v7 = vld [vmem:[%s416_s26 + $0x4] sm:$0x1] (%p1603_p3)  ;;  %v437_v8 = vld [vmem:[%s416_s26 + $0x8] sm:$0x1] (%p1603_p3) }
  0x17   : > { %s415_s14 = scalar_lea.vmem (%p1603_p3), [#allocation4], %s1382_s13 }
  0x18   : > { %434 = vst [vmem:[%s415_s14] sm:$0x1] (%p1603_p3), %v433_v6  ;;  %436 = vst [vmem:[%s415_s14 + $0x1] sm:$0x1] (%p1603_p3), %v435_v7 }
  0x19   : > { %438 = vst [vmem:[%s415_s14 + $0x2] sm:$0x1] %v437_v8 }
  0x1a PF: > { %p1264_p6 = scmp.ge.s32.totalorder %s1519_s9, 1  ;;  %p466_p7 = scmp.lt.s32.totalorder %s1519_s9, 5 }
  0x1c   : > { %p467_p8 = pnand %p1264_p6, %p466_p7 }
  0x1d   : > { %s473_s12 = sand.u32 (!%p467_p8), 1, %s1503_s27   ;;  %p560_p9 = scmp.lt.s32.totalorder (!%p467_p8), %s1511_s29, 3 }
  0x1e   : > { %470 = sbr.rel (%p467_p8) target bundleno = 1192 (0x4a8), region = 119  ;;  %p1296_p10 = scmp.ne.s32.totalorder (!%p467_p8), %s1511_s29, 0 }
  0x1f   : > { %s1383_s16 = smul.u32 (!%p467_p8), 48, %s473_s12 }
  0x20   : > { %s1384_s24 = smul.u32 (!%p467_p8), 3, %s473_s12 }
  0x21   : > { %s475_s17 = scalar_lea.vmem (!%p467_p8), [#allocation3], %s1383_s16 }
  0x22   : > { %s1665_s25 = scalar_lea.vmem (!%p467_p8), [#allocation4], %s1384_s24 }
  0x23   : > { %v1521_v9 = vmov 0.0   ;;  %vm1522_vm0 = vmmov 0   ;;  %v1436_v10 = vld [vmem:[%s475_s17 + $0x18] sm:$0xff]   ;;  %v1437_v11 = vld [vmem:[%s475_s17 + $0x8] sm:$0xff]   ;;  %v1438_v12 = vld [vmem:[%s475_s17 + $0x10] sm:$0xff]   ;;  %vm596_vm1 = vcmask 261120  }
  0x24   : > { %1335 = vmatprep.subr.bf16.mxu1 %v1521_v9  ;;  %1327 = vmatprep.subr.bf16.mxu0 %v1521_v9  ;;  %v1439_v13 = vld [vmem:[%s475_s17] sm:$0xff]   ;;  %v1442_v16 = vld [vmem:[%s475_s17 + $0x28] sm:$0xff]   ;;  %vm799_vm2 = vcmask 64512   ;;  %vm931_vm3 = vcmask 1043456   ;;  %s561_s13 = scalar_select %p560_p9, %s1511_s29, 3 }
  0x25   : > { %1339 = vmatprep.mubr.msk.bf16.mxu1 %vm1522_vm0, %v1521_v9  ;;  %1331 = vmatprep.mubr.msk.bf16.mxu0 %vm1522_vm0, %v1521_v9  ;;  %v1440_v14 = vld [vmem:[%s1745_s1] sm:$0xff]   ;;  %v1276_v19 = vld [vmem:[%s1665_s25 + $0x1] ss:$0 sm:$0xff]  ;;  %v1266_v20 = vld [vmem:[%s1665_s25] ss:$0 sm:$0xff] }
  0x26   : > { %1336 = vmatpush3.bf16.msra.mxu1 %v1436_v10  ;;  %1328 = vmatpush3.bf16.msra.mxu0 %v1437_v11  ;;  %v1441_v15 = vld [vmem:[%s1744_s0] sm:$0xff]   ;;  %v1286_v41 = vld [vmem:[%s1665_s25 + $0x2] ss:$0 sm:$0xff]  ;;  %s1265_s14 = sshll.u32 %s561_s13, 2 }
  0x27   : > { %1337 = vmatprep.subr.bf16.mxu1 %v1521_v9  ;;  %1329 = vmatprep.subr.bf16.mxu0 %v1521_v9  ;;  %v1443_v17 = vld [vmem:[%s475_s17 + $0x20] sm:$0xff]   ;;  %s563_s17 = scalar_lea.vmem %s1750_s6, %s1265_s14 }
  0x28   : > { %v1444_v18 = vld [vmem:[%s1746_s2] sm:$0xff]  }
  0x29   : > { %v1305_v52 = vld [vmem:[%s1747_s3] sm:$0xf]  }
  0x2a   : > { %1338 = vmatpush3.bf16.msra.mxu1 %v1438_v12  ;;  %1330 = vmatpush3.bf16.msra.mxu0 %v1439_v13  ;;  %v1306_v53 = vunpack.c.0.s8 %v1305_v52  ;;  %v1307_v55 = vunpack.c.1.s8 %v1305_v52 }
  0x2b   : > { %1351 = vmatprep.subr.bf16.mxu1 %v1521_v9  ;;  %1343 = vmatprep.subr.bf16.mxu0 %v1521_v9 }
  0x2c   : > { %v896_v54 = vcvt.s32.f32 %v1306_v53  ;;  %v897_v56 = vcvt.s32.f32 %v1307_v55 }
  0x2d   : > { %1340 = vmatmul.mubr.msk.bf16.vlgmr.msra.gmra.mxu1 %vm596_vm1, %v1440_v14  ;;  %1332 = vmatmul.mubr.msk.bf16.vlgmr.msra.gmra.mxu0 %vm596_vm1, %v1441_v15 }
  0x2e   : > { %1353 = vmatprep.mubr.msk.bf16.mxu1 %vm1522_vm0, %v1521_v9  ;;  %1344 = vmatpush3.bf16.msra.mxu0 %v1442_v16  ;;  %vm898_vm4 = vcmp.gt.f32.partialorder %v896_v54, 0.0  ;;  %vm899_vm5 = vcmp.gt.f32.partialorder %v897_v56, 0.0 }
  0x2f   : > { %1347 = vmatprep.mubr.msk.bf16.mxu0 %vm1522_vm0, %v1521_v9  ;;  %1345 = vmatprep.subr.bf16.mxu0 %v1521_v9 }
  0x32   : > { %1346 = vmatpush3.bf16.msra.mxu0 %v1443_v17 }
  0x33   : > { %1357 = vmatprep.subr.bf16.mxu0 %v1521_v9 }
  0x35   : > { %1348 = vmatmul.mubr.msk.bf16.vlgmr.msra.gmra.mxu0 %vm596_vm1, %v1444_v18 }
  0x36   : > { %1359 = vmatprep.mubr.msk.bf16.mxu0 %vm1522_vm0, %v1521_v9 }
  0xed   : > { %v712_v21 = vpop.f32.mrf.mxu1  ;;  %v634_v23 = vpop.f32.mrf.mxu0 }
  0xee   : > { %v713_v22 = vadd.f32 %v1276_v19, %v712_v21  ;;  %v635_v24 = vadd.f32 %v1266_v20, %v634_v23 }
  0xef   : > { %v1341_v25 = vpop.f32.mrf.mxu1  ;;  %v1333_v27 = vpop.f32.mrf.mxu0 }
  0xf0   : > { %v797_v26 = vpack.c.bf16 %v713_v22, %v713_v22  ;;  %v641_v30 = vmul.f32 0.35355338, %v635_v24  ;;  %v1022_v24 = vld [vmem:[%s563_s17] sm:$0xf] }
  0xf1   : > { %v715_v28 = vpop.f32.mrf.mxu1  ;;  %v637_v32 = vpop.f32.mrf.mxu0  ;;  %v1027_v25 = vsel %vm931_vm3, %v1022_v24, 0 }
  0xf2   : > { %v804_v29 = vsel %vm799_vm2, %v797_v26, 0  ;;  %v716_v31 = vadd.f32 %v1276_v19, %v715_v28  ;;  %v638_v35 = vadd.f32 %v1266_v20, %v637_v32  ;;  %v795_v37 = vpack.c.bf16 %v641_v30, %v641_v30 }
  0xf3   : > { %v1342_v33 = vpop.f32.mrf.mxu1  ;;  %1352 = vmatpush3.bf16.xpose.msra.mxu1 %v804_v29  ;;  %v1334_v36 = vpop.f32.mrf.mxu0 }
  0xf4   : > { %v798_v34 = vpack.c.bf16 %v716_v31, %v716_v31  ;;  %1363 = vmatprep.subr.bf16.mxu1 %v1521_v9  ;;  %v642_v39 = vmul.f32 0.35355338, %v638_v35 }
  0xf5   : > { %v788_v42 = vpop.f32.mrf.mxu0 }
  0xf6   : > { %v850_v38 = vsel %vm799_vm2, %v798_v34, 0  ;;  %v796_v40 = vpack.c.bf16 %v642_v39, %v642_v39  ;;  %v789_v43 = vadd.f32 %v1286_v41, %v788_v42 }
  0xf7   : > { %1358 = vmatpush3.bf16.xpose.msra.mxu0 %v850_v38  ;;  %v1349_v44 = vpop.f32.mrf.mxu0 }
  0xf8   : > { %1369 = vmatprep.subr.bf16.mxu0 %v1521_v9  ;;  %v926_v45 = vpack.c.bf16 %v789_v43, %v789_v43 }
  0xf9   : > { %v791_v46 = vpop.f32.mrf.mxu0 }
  0xfa   : > { %1354 = vmatmul.mubr.msk.bf16.vlgmr.msra.gmra.mxu1 %vm799_vm2, %v795_v37  ;;  %v933_v47 = vsel %vm931_vm3, %v926_v45, 0  ;;  %v792_v48 = vadd.f32 %v1286_v41, %v791_v46 }
  0xfb   : > { %1365 = vmatprep.mubr.msk.bf16.mxu1 %vm1522_vm0, %v1521_v9  ;;  %v1350_v49 = vpop.f32.mrf.mxu0  ;;  %1364 = vmatpush3.bf16.msra.mxu1 %v933_v47 }
  0xfc   : > { %v927_v50 = vpack.c.bf16 %v792_v48, %v792_v48  ;;  %1375 = vmatprep.subr.bf16.mxu1 %v1521_v9 }
  0xfe   : > { %1360 = vmatmul.mubr.msk.bf16.vlgmr.msra.gmra.mxu0 %vm799_vm2, %v796_v40  ;;  %v979_v51 = vsel %vm931_vm3, %v927_v50, 0 }
  0xff   : > { %1371 = vmatprep.mubr.msk.bf16.mxu0 %vm1522_vm0, %v1521_v9  ;;  %1370 = vmatpush3.bf16.msra.mxu0 %v979_v51 }
 0x1ba   : > { %v840_v57 = vpop.f32.mrf.mxu1 }
 0x1bb   : > { %v900_v58 = vsel %vm898_vm4, %v840_v57, -1e+30 }
 0x1bc   : > { %v1355_v59 = vpop.f32.mrf.mxu1  ;;  %v902_v60 = vsel %vm799_vm2, %v900_v58, -inf }
 0x1bd   : > { %903 = vmax.xlane.f32.xlu0 %v902_v60 }
 0x1be   : > { %v843_v61 = vpop.f32.mrf.mxu1  ;;  %v886_v62 = vpop.f32.mrf.mxu0 }
 0x1bf   : > { %v901_v63 = vsel %vm899_vm5, %v886_v62, -1e+30 }
 0x1c0   : > { %v1356_v0 = vpop.f32.mrf.mxu1  ;;  %v1361_v1 = vpop.f32.mrf.mxu0  ;;  %v905_v2 = vsel %vm799_vm2, %v901_v63, -inf }
 0x1c1   : > { %906 = vmax.xlane.f32.xlu0 %v905_v2 }
 0x1c2   : > { %v889_v3 = vpop.f32.mrf.mxu0 }
 0x1c4   : > { %v1362_v4 = vpop.f32.mrf.mxu0 }
 0x246   : > { %v904_v5 = vpop.xlane.xlu0 %903 }
 0x247   : > { %v908_v6 = vsub.f32 %v900_v58, %v904_v5 }
 0x249   : > { %v910_v7 = vmul.f32 1.442695, %v908_v6 }
 0x24a   : > { %v907_v8 = vpop.xlane.xlu0 %906 }
 0x24b   : > { %1445 = vpow2.f32 %v910_v7  ;;  %v909_v10 = vsub.f32 %v901_v63, %v907_v8 }
 0x24d   : > { %v912_v11 = vmul.f32 1.442695, %v909_v10 }
 0x24f   : > { %1447 = vpow2.f32 %v912_v11 }
 0x258   : > { %v1446_v12 = vpop.eup %1445 }
 0x259   : > { %v914_v13 = vsel %vm799_vm2, %v1446_v12, 0.0 }
 0x25a   : > { %915 = vadd.xlane.f32.xlu1 %v914_v13 }
 0x25c   : > { %v1448_v14 = vpop.eup %1447 }
 0x25d   : > { %v917_v15 = vsel %vm799_vm2, %v1448_v14, 0.0 }
 0x25e   : > { %918 = vadd.xlane.f32.xlu1 %v917_v15 }
 0x2e3   : > { %v916_v16 = vpop.xlane.xlu1 %915 }
 0x2e4   : > { %1449 = vrcp.f32 %v916_v16 }
 0x2e7   : > { %v919_v17 = vpop.xlane.xlu1 %918 }
 0x2e8   : > { %1451 = vrcp.f32 %v919_v17 }
 0x2f1   : > { %v1450_v18 = vpop.eup %1449 }
 0x2f2   : > { %v922_v19 = vmul.f32 %v1450_v18, %v1446_v12 }
 0x2f4   : > { %v924_v20 = vpack.c.bf16 %v922_v19, %v922_v19 }
 0x2f5   : > { %v1452_v21 = vpop.eup %1451 }
 0x2f6   : > { %1366 = vmatmul.mubr.msk.bf16.vlgmr.msra.gmra.mxu1 %vm799_vm2, %v924_v20  ;;  %v923_v22 = vmul.f32 %v1452_v21, %v1448_v14 }
 0x2f7   : > { %1377 = vmatprep.mubr.msk.bf16.mxu1 %vm1522_vm0, %v1521_v9  ;;  %1376 = vmatpush3.bf16.msra.mxu1 %v1027_v25 }
 0x2f8   : > { %v925_v23 = vpack.c.bf16 %v923_v22, %v923_v22 }
 0x2fa   : > { %1372 = vmatmul.mubr.msk.bf16.vlgmr.msra.gmra.mxu0 %vm799_vm2, %v925_v23 }
 0x3b6   : > { %v969_v26 = vpop.f32.mrf.mxu1 }
 0x3b8   : > { %v1367_v27 = vpop.f32.mrf.mxu1 }
 0x3ba   : > { %v972_v28 = vpop.f32.mrf.mxu1  ;;  %v1015_v29 = vpop.f32.mrf.mxu0 }
 0x3bb   : > { %v1021_v30 = vpack.c.bf16 %v1015_v29, %v969_v26 }
 0x3bc   : > { %v1368_v9 = vpop.f32.mrf.mxu1  ;;  %v1373_v31 = vpop.f32.mrf.mxu0 }
 0x3bd   : > { %1378 = vmatmul.mubr.msk.bf16.vlgmr.msra.gmra.mxu1 %vm799_vm2, %v1021_v30 }
 0x3be   : > { %v1018_v32 = vpop.f32.mrf.mxu0 }
 0x3c0   : > { %v1374_v33 = vpop.f32.mrf.mxu0 }
 0x47d   : > { %v1063_v34 = vpop.f32.mrf.mxu1 }
 0x47f   : > { %v1379_v35 = vpop.f32.mrf.mxu1  ;;  %1073 = sbr.rel (%p1296_p10) target bundleno = 1158 (0x486), region = 131 }
 0x481   : > { %v1066_v36 = vpop.f32.mrf.mxu1 }
 0x483   : > { %v1380_v37 = vpop.f32.mrf.mxu1 }
 0x484   : > { %v1297_v38 = vld [vmem:[%s1751_s7] ss:$0 sm:$0xff] }
 0x485   : > { %1082 = vst.msk [vmem:[#allocation2] sm:$0xff] %vm596_vm1, %v1297_v38  ;;  %1083 = vst.msk [vmem:[#allocation2 + $0x8] sm:$0xff] %vm596_vm1, %v1297_v38 }
 0x486 PF: > { %p1298_p11 = scmp.ne.s32.totalorder %s1511_s29, 3 }
 0x48b   : > { %1093 = sbr.rel (%p1298_p11) target bundleno = 1176 (0x498), region = 135 }
 0x48c   : > { %v1084_v39 = vld [vmem:[#allocation2] sm:$0xff]  ;;  %v1085_v40 = vld [vmem:[#allocation2 + $0x8] sm:$0xff] }
 0x48d   : > { %v1086_v41 = vadd.f32 %v1084_v39, %v1063_v34  ;;  %v1087_v42 = vadd.f32 %v1085_v40, %v1066_v36 }
 0x48f   : > { %1088 = vst.msk [vmem:[#allocation2] sm:$0xff] %vm596_vm1, %v1086_v41  ;;  %1089 = vst.msk [vmem:[#allocation2 + $0x8] sm:$0xff] %vm596_vm1, %v1087_v42 }
 0x496   : > { %v1094_v43 = vld [vmem:[#allocation2] sm:$0xff]  ;;  %v1095_v44 = vld [vmem:[#allocation2 + $0x8] sm:$0xff] }
 0x497   : > { %1096 = vst.msk [vmem:[#allocation5] sm:$0xff] %vm596_vm1, %v1094_v43  ;;  %1097 = vst.msk [vmem:[#allocation5 + $0x8] sm:$0xff] %vm596_vm1, %v1095_v44 }
 0x498 PF: > { %p1714_p12 = scmp.eq.s32.totalorder %s1255_s10, 3  ;;  %s1523_s21 = smov [#allocation5]  }
 0x499   : > { %s1107_s22 = sshll.u32 %s1523_s21, 4  ;;  %s1108_s22 = int_to_ptr.vmem [resolvable:$true] %s1107_s22 }
 0x49a   : > { %s1453_s23 = scalar_lea.vmem %s1108_s22, 256  ;;  %p1460_p2 = scmp.lt.s32.totalorder %s1108_s22, %s1108_s22 }
 0x49b   : > { %p1454_p13 = scmp.ne.s32.totalorder %s1108_s22, %s1453_s23  ;;  %p1461_p3 = scmp.lt.s32.totalorder %s1453_s23, %s1453_s23 }
 0x49d   : > { %p1455_p0 = pnand %p1454_p13, %p1714_p12  ;;  %p1462_p4 = por %p1461_p3, %p1460_p2 }
 0x49f   : > { %p1456_p1 = pneg %p1455_p0 }
 0x4a1   : > { %p1463_p5 = pnand %p1462_p4, %p1456_p1 }
 0x4a3   : > { %1466 = shalt.err (!%p1463_p5)
}
 0x4a4   : > { %s1524_s29 = smov 128   ;;  %s1525_s10 = smov 8  }
 0x4a5   : > { %1386 = dma.vmem_to_hbm [thread:$0]  (%p1714_p12), %s1108_s22, 256, %s1752_s8, [#allocation6], %s1524_s29, %s1524_s29, %s1525_s10  }
 0x4a6   : > { %1498 = dma.done.wait (%p1714_p12), [#allocation6], 256  }
 0x4a7   : > { %1500 = vsyncadd (%p1714_p12), [#allocation6], 4294967040 }
 0x4a8 PF: > { %s19_s9 = sadd.s32 1, %s1519_s9   ;;  %s1755_s27 = smov %s1507_s28 }
 0x4a9   : > { %p16_p6 = scmp.ge.s32.totalorder %s19_s9, 6   ;;  %s1756_s28 = smov %s1611_s15 }
 0x4aa   : > { %s1757_s29 = smov %s1515_s30  ;;  %s1758_s30 = smov %s1760_s11 }
 0x4ab   :  { %18 = sbr.rel (!%p16_p6) target bundleno = 3 (0x3), region = 195 }
 0x4b0   :  { %1123 = vsyncpa [#allocation6], 1 }
 0x4b1   :  { %1125 = vsyncpa [#allocation6 + $0x1], 1 }

</bundles_post_ra>
